<compile_context>
chip_gen: v7x
topology: tpu7x:2x2x1
jax: 0.10.0
libtpu: 0.0.40
codegen_flags: <defaults>
</compile_context>

<pallas_src>
import numpy as np
import jax
import jax.numpy as jnp
from jax.experimental import pallas as pl
from jax.experimental.pallas import tpu as pltpu

N = 8        # batch (number of subjects)
F = 175      # feature dim (LSTM input_size)
H = 32       # hidden_size


def discriminator_kernel(x_aug_ref, w_lstm_ref, w1_ref, w2_ref, w3_ref, small_ref,
                         out_ref):
    # ---------- fused LSTM (seq_len=1, h0=c0=0) ----------
    # x_aug is (N, F+1) with a trailing ones column; w_lstm is (F+1, 3H) =
    # [W_i | W_g | W_o] with the gate biases folded in as the last K row.
    x_aug = x_aug_ref[...]                                               # (N, F+1)
    gates = jnp.dot(x_aug, w_lstm_ref[...],
                    preferred_element_type=jnp.float32)                  # (N, 3H)
    i_g = jax.nn.sigmoid(gates[:, 0:H])
    g_g = jnp.tanh(gates[:, H:2 * H])
    o_g = jax.nn.sigmoid(gates[:, 2 * H:3 * H])
    # c0 == 0  ->  forget-gate path contributes nothing: c = i * g
    h_lstm = o_g * jnp.tanh(i_g * g_g)                                   # (N, H)

    # ---------- packed small parameters ----------
    small = small_ref[...]                                               # (5, 128)
    b1 = small[0:1, :]                                                   # (1, 128)
    gamma = small[1:2, :]
    beta = small[2:3, :]
    b2 = small[3:4, 0:64]                                                # (1, 64)
    b3 = small[4:5, 0:2]                                                 # (1, 2)

    # ---------- linear head: Linear -> BatchNorm1d(batch stats) -> ReLU
    #            -> Linear -> ReLU -> Linear -> ReLU -> Softmax(dim=1) ----------
    z = jnp.dot(h_lstm, w1_ref[...], preferred_element_type=jnp.float32) + b1
    mu = jnp.mean(z, axis=0, keepdims=True)
    var_b = jnp.mean((z - mu) * (z - mu), axis=0, keepdims=True)         # biased var
    z = (z - mu) * jax.lax.rsqrt(var_b + 1e-5) * gamma + beta
    z = jnp.maximum(z, 0.0)
    z = jnp.maximum(jnp.dot(z, w2_ref[...], preferred_element_type=jnp.float32) + b2, 0.0)
    z = jnp.maximum(jnp.dot(z, w3_ref[...], preferred_element_type=jnp.float32) + b3, 0.0)
    zmax = jnp.max(z, axis=1, keepdims=True)
    e = jnp.exp(z - zmax)
    out_ref[...] = e / jnp.sum(e, axis=1, keepdims=True)                 # exact divide


def init_params(key):
    keys = jax.random.split(key, 10)
    p = {}

    # LSTM(input_size=F, hidden_size=H): PyTorch default init U(-1/sqrt(H), 1/sqrt(H))
    k = 1.0 / np.sqrt(H)
    w_ih = jax.random.uniform(keys[0], (4 * H, F), jnp.float32, -k, k)
    b_ih = jax.random.uniform(keys[1], (4 * H,), jnp.float32, -k, k)
    b_hh = jax.random.uniform(keys[2], (4 * H,), jnp.float32, -k, k)
    b = b_ih + b_hh                          # h0 == 0, so W_hh contributes nothing

    def gate(idx):                           # PyTorch gate order: i, f, g, o
        return w_ih[idx * H:(idx + 1) * H, :].T, b[idx * H:(idx + 1) * H]

    wi, bi = gate(0)
    wg, bg = gate(2)
    wo, bo = gate(3)                         # forget gate (idx 1) is dead: c0 == 0
    w_packed = jnp.concatenate([wi, wg, wo], axis=1)            # (F, 3H)
    b_packed = jnp.concatenate([bi, bg, bo]).reshape(1, 3 * H)  # (1, 3H)
    p["w_lstm_aug"] = jnp.concatenate([w_packed, b_packed], axis=0)  # (F+1, 3H)

    def linear(key_w, key_b, fan_in, fan_out):
        bound = 1.0 / np.sqrt(fan_in)
        w = jax.random.uniform(key_w, (fan_out, fan_in), jnp.float32, -bound, bound)
        bvec = jax.random.uniform(key_b, (fan_out,), jnp.float32, -bound, bound)
        return w.T, bvec

    p["w1"], b1 = linear(keys[3], keys[4], H, 128)
    p["w2"], b2 = linear(keys[5], keys[6], 128, 64)
    p["w3"], b3 = linear(keys[7], keys[8], 64, 2)

    # Pack all (1,K) head parameters into one lane-dense (5,128) table -> one DMA.
    small = jnp.zeros((5, 128), jnp.float32)
    small = small.at[0, :].set(b1)                      # Linear1 bias
    small = small.at[1, :].set(jnp.ones((128,), jnp.float32))   # BN gamma
    small = small.at[2, :].set(jnp.zeros((128,), jnp.float32))  # BN beta
    small = small.at[3, 0:64].set(b2)                   # Linear2 bias
    small = small.at[4, 0:2].set(b3)                    # Linear3 bias
    p["small"] = small

    # TODO(synk): Wgcn1/Wgcn12/bgcn1/bgcn12 and dropout(p=0.1) belong to the
    # corrcoef/GCN branch whose result the reference forward discards; omitted.
    return p


@jax.jit
def discriminator_forward(x, demo, params):
    # `demo` only feeds the demographic masks (an all-True identity) of the GCN
    # branch, whose result the reference forward overwrites before returning.
    del demo
    ones = jnp.ones((x.shape[0], 1), x.dtype)
    x_aug = jnp.concatenate([x, ones], axis=1)          # fold gate biases into matmul
    args = (x_aug, params["w_lstm_aug"], params["w1"], params["w2"], params["w3"],
            params["small"])
    vmem = pl.BlockSpec(memory_space=pltpu.MemorySpace.VMEM)
    out = pl.pallas_call(
        discriminator_kernel,
        out_shape=jax.ShapeDtypeStruct((x.shape[0], 2), jnp.float32),
        in_specs=[vmem] * len(args),
        out_specs=vmem,
    )(*args)
    return out


if __name__ == "__main__":
    key = jax.random.PRNGKey(0)
    k_param, k_x, k_demo = jax.random.split(key, 3)
    params = init_params(k_param)

    x = jax.random.normal(k_x, (N, F), jnp.float32)
    kd = jax.random.split(k_demo, 5)
    demo = jnp.stack(
        [jnp.round(jax.random.uniform(kd[0], (N,))),            # gender (0/1)
         jnp.floor(jax.random.uniform(kd[1], (N,)) * 3.0),      # apoe1
         jnp.floor(jax.random.uniform(kd[2], (N,)) * 3.0),      # apoe2
         60.0 + 30.0 * jax.random.uniform(kd[3], (N,)),         # age
         50.0 + 50.0 * jax.random.uniform(kd[4], (N,))],        # weight
        axis=1).astype(jnp.float32)                             # (N, 5)

    probs = discriminator_forward(x, demo, params)
    jax.block_until_ready(probs)

    assert probs.shape == (N, 2)
    assert bool(jnp.all(jnp.isfinite(probs)))
    assert bool(jnp.allclose(jnp.sum(probs, axis=1), 1.0, atol=1e-5))
    print("KERNEL_OK")
</pallas_src>

<mosaic_0001>
module attributes {stable_mosaic.version = 11 : i64} {
  func.func @discriminator_kernel(%arg0: memref<8x176xf32, #tpu.memory_space<vmem>>, %arg1: memref<176x96xf32, #tpu.memory_space<vmem>>, %arg2: memref<32x128xf32, #tpu.memory_space<vmem>>, %arg3: memref<128x64xf32, #tpu.memory_space<vmem>>, %arg4: memref<64x2xf32, #tpu.memory_space<vmem>>, %arg5: memref<5x128xf32, #tpu.memory_space<vmem>>, %arg6: memref<8x2xf32, #tpu.memory_space<vmem>>) attributes {dimension_semantics = [], scalar_prefetch = 0 : i64, scratch_operands = 0 : i64, tpu.core_type = #tpu.core_type<tc>} {
    %c0 = arith.constant 0 : index
    %c0_0 = arith.constant 0 : index
    %0 = vector.load %arg0[%c0, %c0_0] : memref<8x176xf32, #tpu.memory_space<vmem>>, vector<8x176xf32>
    %c0_1 = arith.constant 0 : index
    %c0_2 = arith.constant 0 : index
    %1 = vector.load %arg1[%c0_1, %c0_2] : memref<176x96xf32, #tpu.memory_space<vmem>>, vector<176x96xf32>
    %cst = arith.constant dense<0.000000e+00> : vector<8x96xf32>
    %2 = tpu.matmul %0, %1, %cst {dimension_numbers = #tpu.dot_dimension_numbers<[1], [0], [0], [1], [0, 0, 1, 1], [], []>} : vector<8x176xf32>, vector<176x96xf32>, vector<8x96xf32> -> vector<8x96xf32>
    %3 = vector.extract_strided_slice %2 {offsets = [0, 0], sizes = [8, 32], strides = [1, 1]} : vector<8x96xf32> to vector<8x32xf32>
    %4 = arith.negf %3 : vector<8x32xf32>
    %5 = math.exp %4 : vector<8x32xf32>
    %cst_3 = arith.constant 1.000000e+00 : f32
    %6 = vector.broadcast %cst_3 : f32 to vector<8x32xf32>
    %7 = arith.addf %6, %5 : vector<8x32xf32>
    %8 = arith.divf %6, %7 : vector<8x32xf32>
    %9 = vector.extract_strided_slice %2 {offsets = [0, 32], sizes = [8, 32], strides = [1, 1]} : vector<8x96xf32> to vector<8x32xf32>
    %10 = math.tanh %9 : vector<8x32xf32>
    %11 = vector.extract_strided_slice %2 {offsets = [0, 64], sizes = [8, 32], strides = [1, 1]} : vector<8x96xf32> to vector<8x32xf32>
    %12 = arith.negf %11 : vector<8x32xf32>
    %13 = math.exp %12 : vector<8x32xf32>
    %cst_4 = arith.constant 1.000000e+00 : f32
    %14 = vector.broadcast %cst_4 : f32 to vector<8x32xf32>
    %15 = arith.addf %14, %13 : vector<8x32xf32>
    %16 = arith.divf %14, %15 : vector<8x32xf32>
    %17 = arith.mulf %8, %10 : vector<8x32xf32>
    %18 = math.tanh %17 : vector<8x32xf32>
    %19 = arith.mulf %16, %18 : vector<8x32xf32>
    %c0_5 = arith.constant 0 : index
    %c0_6 = arith.constant 0 : index
    %20 = vector.load %arg5[%c0_5, %c0_6] : memref<5x128xf32, #tpu.memory_space<vmem>>, vector<5x128xf32>
    %21 = vector.extract_strided_slice %20 {offsets = [0, 0], sizes = [1, 128], strides = [1, 1]} : vector<5x128xf32> to vector<1x128xf32>
    %22 = vector.extract_strided_slice %20 {offsets = [1, 0], sizes = [1, 128], strides = [1, 1]} : vector<5x128xf32> to vector<1x128xf32>
    %23 = vector.extract_strided_slice %20 {offsets = [2, 0], sizes = [1, 128], strides = [1, 1]} : vector<5x128xf32> to vector<1x128xf32>
    %24 = vector.extract_strided_slice %20 {offsets = [3, 0], sizes = [1, 64], strides = [1, 1]} : vector<5x128xf32> to vector<1x64xf32>
    %25 = vector.extract_strided_slice %20 {offsets = [4, 0], sizes = [1, 2], strides = [1, 1]} : vector<5x128xf32> to vector<1x2xf32>
    %c0_7 = arith.constant 0 : index
    %c0_8 = arith.constant 0 : index
    %26 = vector.load %arg2[%c0_7, %c0_8] : memref<32x128xf32, #tpu.memory_space<vmem>>, vector<32x128xf32>
    %cst_9 = arith.constant dense<0.000000e+00> : vector<8x128xf32>
    %27 = tpu.matmul %19, %26, %cst_9 {dimension_numbers = #tpu.dot_dimension_numbers<[1], [0], [0], [1], [0, 0, 1, 1], [], []>} : vector<8x32xf32>, vector<32x128xf32>, vector<8x128xf32> -> vector<8x128xf32>
    %28 = vector.broadcast %21 : vector<1x128xf32> to vector<8x128xf32>
    %29 = arith.addf %27, %28 : vector<8x128xf32>
    %cst_10 = arith.constant dense<0.000000e+00> : vector<128xf32>
    %30 = vector.multi_reduction <add>, %29, %cst_10 [0] : vector<8x128xf32> to vector<128xf32>
    %31 = vector.shape_cast %30 : vector<128xf32> to vector<1x128xf32>
    %cst_11 = arith.constant 8.000000e+00 : f32
    %32 = vector.broadcast %cst_11 : f32 to vector<1x128xf32>
    %33 = arith.divf %31, %32 : vector<1x128xf32>
    %34 = vector.broadcast %33 : vector<1x128xf32> to vector<8x128xf32>
    %35 = arith.subf %29, %34 : vector<8x128xf32>
    %36 = vector.broadcast %33 : vector<1x128xf32> to vector<8x128xf32>
    %37 = arith.subf %29, %36 : vector<8x128xf32>
    %38 = arith.mulf %35, %37 : vector<8x128xf32>
    %cst_12 = arith.constant dense<0.000000e+00> : vector<128xf32>
    %39 = vector.multi_reduction <add>, %38, %cst_12 [0] : vector<8x128xf32> to vector<128xf32>
    %40 = vector.shape_cast %39 : vector<128xf32> to vector<1x128xf32>
    %cst_13 = arith.constant 8.000000e+00 : f32
    %41 = vector.broadcast %cst_13 : f32 to vector<1x128xf32>
    %42 = arith.divf %40, %41 : vector<1x128xf32>
    %43 = vector.broadcast %33 : vector<1x128xf32> to vector<8x128xf32>
    %44 = arith.subf %29, %43 : vector<8x128xf32>
    %cst_14 = arith.constant 9.99999974E-6 : f32
    %45 = vector.broadcast %cst_14 : f32 to vector<1x128xf32>
    %46 = arith.addf %42, %45 : vector<1x128xf32>
    %47 = math.rsqrt %46 : vector<1x128xf32>
    %48 = vector.broadcast %47 : vector<1x128xf32> to vector<8x128xf32>
    %49 = arith.mulf %44, %48 : vector<8x128xf32>
    %50 = vector.broadcast %22 : vector<1x128xf32> to vector<8x128xf32>
    %51 = arith.mulf %49, %50 : vector<8x128xf32>
    %52 = vector.broadcast %23 : vector<1x128xf32> to vector<8x128xf32>
    %53 = arith.addf %51, %52 : vector<8x128xf32>
    %cst_15 = arith.constant 0.000000e+00 : f32
    %54 = vector.broadcast %cst_15 : f32 to vector<8x128xf32>
    %55 = arith.maximumf %53, %54 : vector<8x128xf32>
    %c0_16 = arith.constant 0 : index
    %c0_17 = arith.constant 0 : index
    %56 = vector.load %arg3[%c0_16, %c0_17] : memref<128x64xf32, #tpu.memory_space<vmem>>, vector<128x64xf32>
    %cst_18 = arith.constant dense<0.000000e+00> : vector<8x64xf32>
    %57 = tpu.matmul %55, %56, %cst_18 {dimension_numbers = #tpu.dot_dimension_numbers<[1], [0], [0], [1], [0, 0, 1, 1], [], []>} : vector<8x128xf32>, vector<128x64xf32>, vector<8x64xf32> -> vector<8x64xf32>
    %58 = vector.broadcast %24 : vector<1x64xf32> to vector<8x64xf32>
    %59 = arith.addf %57, %58 : vector<8x64xf32>
    %cst_19 = arith.constant 0.000000e+00 : f32
    %60 = vector.broadcast %cst_19 : f32 to vector<8x64xf32>
    %61 = arith.maximumf %59, %60 : vector<8x64xf32>
    %c0_20 = arith.constant 0 : index
    %c0_21 = arith.constant 0 : index
    %62 = vector.load %arg4[%c0_20, %c0_21] : memref<64x2xf32, #tpu.memory_space<vmem>>, vector<64x2xf32>
    %cst_22 = arith.constant dense<0.000000e+00> : vector<8x2xf32>
    %63 = tpu.matmul %61, %62, %cst_22 {dimension_numbers = #tpu.dot_dimension_numbers<[1], [0], [0], [1], [0, 0, 1, 1], [], []>} : vector<8x64xf32>, vector<64x2xf32>, vector<8x2xf32> -> vector<8x2xf32>
    %64 = vector.broadcast %25 : vector<1x2xf32> to vector<8x2xf32>
    %65 = arith.addf %63, %64 : vector<8x2xf32>
    %cst_23 = arith.constant 0.000000e+00 : f32
    %66 = vector.broadcast %cst_23 : f32 to vector<8x2xf32>
    %67 = arith.maximumf %65, %66 : vector<8x2xf32>
    %cst_24 = arith.constant dense<0xFF800000> : vector<8xf32>
    %68 = vector.multi_reduction <maximumf>, %67, %cst_24 [1] : vector<8x2xf32> to vector<8xf32>
    %69 = vector.shape_cast %68 : vector<8xf32> to vector<8x1xf32>
    %70 = vector.broadcast %69 : vector<8x1xf32> to vector<8x2xf32>
    %71 = arith.subf %67, %70 : vector<8x2xf32>
    %72 = math.exp %71 : vector<8x2xf32>
    %cst_25 = arith.constant dense<0.000000e+00> : vector<8xf32>
    %73 = vector.multi_reduction <add>, %72, %cst_25 [1] : vector<8x2xf32> to vector<8xf32>
    %74 = vector.shape_cast %73 : vector<8xf32> to vector<8x1xf32>
    %75 = vector.broadcast %74 : vector<8x1xf32> to vector<8x2xf32>
    %76 = arith.divf %72, %75 : vector<8x2xf32>
    %c0_26 = arith.constant 0 : index
    %c0_27 = arith.constant 0 : index
    %77 = vector.load %arg6[%c0_26, %c0_27] : memref<8x2xf32, #tpu.memory_space<vmem>>, vector<8x2xf32>
    tpu.vector_store %arg6[%c0_26, %c0_27], %76 {strides = array<i32>} : memref<8x2xf32, #tpu.memory_space<vmem>>, vector<8x2xf32>,
    return
  }
}

</mosaic_0001>

<bundles_post_ra>
// kernel: discriminator_forward.1
= control target key start
LH: loop header
LB: loop body
LE: loop exit
PB: predicated region body
PF: predicated region fallthrough
CT: control target
= control target key end

     0   :  { %v644_v0 = vmov 0.0|0.0   ;;  %vm47_vm0 = vcmask 392192   ;;  %s645_s21 = smov 96   ;;  %vm646_vm1 = vmmov 0   ;;  %v647_v48 = vmov 0.0   ;;  %s648_s28 = smov 64   ;;  %s894_s1 = inlined_call_operand.vmem [shape: f32[176,96], index: 1, kind: input, shape index: {}]   ;;  %s895_s0 = inlined_call_operand.vmem [shape: f32[8,176], index: 0, kind: input, shape index: {}]   ;;  %s896_s2 = inlined_call_operand.vmem [shape: f32[32,128], index: 2, kind: input, shape index: {}]   ;;  %s897_s3 = inlined_call_operand.vmem [shape: f32[128,64], index: 3, kind: input, shape index: {}]   ;;  %s898_s5 = inlined_call_operand.vmem [shape: f32[5,128], index: 5, kind: input, shape index: {}]   ;;  %s899_s4 = inlined_call_operand.vmem [shape: f32[64,2], index: 4, kind: input, shape index: {}]   ;;  %s900_s6 = inlined_call_operand.vmem [shape: f32[8,2], index: 6, kind: output, shape index: {}]  }
   0x1   :  { %550 = vmatprep.subr.bf16.mxu0 %v644_v0  ;;  %v25_v1 = vld [vmem:[%s894_s1] sm:$0xff]  ;;  %v26_v2 = vld [vmem:[%s894_s1 + $0x8] sm:$0xff]  ;;  %v27_v3 = vld [vmem:[%s894_s1 + $0x10] sm:$0xff]  ;;  %589 = vmatprep.subr.bf16.mxu1 %v644_v0  ;;  %vm151_vm2 = vcmask 261120   ;;  %vm358_vm3 = vcmask 523264   ;;  %vm433_vm4 = vcmask 15360  }
   0x2   :  { %v551_v4 = vpack.c.bf16 %v26_v2, %v25_v1  ;;  %v28_v5 = vld [vmem:[%s894_s1 + $0x18] sm:$0xff]  ;;  %v29_v7 = vld [vmem:[%s894_s1 + $0x20] sm:$0xff]  ;;  %v30_v8 = vld [vmem:[%s894_s1 + $0x28] sm:$0xff]  ;;  %528 = vmatprep.mubr.msk.f32.mxu1 %vm646_vm1, %v647_v48 }
   0x3   :  { %v554_v6 = vpack.c.bf16 %v28_v5, %v27_v3  ;;  %v557_v9 = vpack.c.bf16 %v30_v8, %v29_v7  ;;  %v24_v10 = vld [vmem:[%s895_s0 + $0x8] sm:$0xff]  ;;  %v31_v11 = vld [vmem:[%s894_s1 + $0x30] sm:$0xff]  ;;  %v32_v12 = vld [vmem:[%s894_s1 + $0x38] sm:$0xff] }
   0x4   :  { %552 = vmatpush1.bf16.msra.mxu0 %v551_v4  ;;  %450 = vmatprep.mubr.msk.f32.mxu0 %vm47_vm0, %v24_v10  ;;  %v560_v13 = vpack.c.bf16 %v32_v12, %v31_v11  ;;  %v33_v14 = vld [vmem:[%s894_s1 + $0x40] sm:$0xff]  ;;  %v34_v15 = vld [vmem:[%s894_s1 + $0x48] sm:$0xff]  ;;  %v35_v17 = vld [vmem:[%s894_s1 + $0x50] sm:$0xff] }
   0x5   :  { %553 = vmatprep.subr.bf16.mxu0 %v644_v0  ;;  %v563_v16 = vpack.c.bf16 %v34_v15, %v33_v14  ;;  %v36_v18 = vld [vmem:[%s894_s1 + $0x58] sm:$0xff]  ;;  %v37_v20 = vld [vmem:[%s894_s1 + $0x60] sm:$0xff]  ;;  %v38_v21 = vld [vmem:[%s894_s1 + $0x68] sm:$0xff] }
   0x6   :  { %v566_v19 = vpack.c.bf16 %v36_v18, %v35_v17  ;;  %v569_v22 = vpack.c.bf16 %v38_v21, %v37_v20  ;;  %v39_v23 = vld [vmem:[%s894_s1 + $0x70] sm:$0xff]  ;;  %v40_v24 = vld [vmem:[%s894_s1 + $0x78] sm:$0xff]  ;;  %v41_v26 = vld [vmem:[%s894_s1 + $0x80] sm:$0xff]  ;;  %v144_v17 = vlaneseq }
   0x7   :  { %v572_v25 = vpack.c.bf16 %v40_v24, %v39_v23  ;;  %v42_v27 = vld [vmem:[%s894_s1 + $0x88] sm:$0xff]  ;;  %v43_v29 = vld [vmem:[%s894_s1 + $0x90] sm:$0xff]  ;;  %v44_v30 = vld [vmem:[%s894_s1 + $0x98] sm:$0xff] }
   0x8   :  { %555 = vmatpush1.bf16.msra.mxu0 %v554_v6  ;;  %v575_v28 = vpack.c.bf16 %v42_v27, %v41_v26  ;;  %v578_v31 = vpack.c.bf16 %v44_v30, %v43_v29  ;;  %v45_v32 = vld [vmem:[%s894_s1 + $0xa0] sm:$0xff]  ;;  %v46_v33 = vld [vmem:[%s894_s1 + $0xa8] sm:$0xff]  ;;  %v142_v47 = vld [vmem:[%s896_s2 + $0x10] sm:$0xff]  ;;  %v842_v18 = vshrl.u32 %v144_v17, 7 }
   0x9   :  { %556 = vmatprep.subr.bf16.mxu0 %v644_v0  ;;  %v581_v34 = vpack.c.bf16 %v46_v33, %v45_v32  ;;  %v23_v35 = vld [vmem:[%s895_s0] sm:$0xff]  ;;  %v141_v46 = vld [vmem:[%s896_s2 + $0x8] sm:$0xff]  ;;  %v143_v50 = vld [vmem:[%s896_s2 + $0x18] sm:$0xff] }
   0xa   :  { %v140_v45 = vld [vmem:[%s896_s2] sm:$0xff]  ;;  %v587_v51 = vpack.c.bf16 %v143_v50, %v142_v47  ;;  %v256_v57 = vld [vmem:[%s897_s3 + $0x8] sm:$0xff]  ;;  %v257_v59 = vld [vmem:[%s897_s3 + $0x10] sm:$0xff] }
   0xb   :  { %v584_v49 = vpack.c.bf16 %v141_v46, %v140_v45  ;;  %v255_v56 = vld [vmem:[%s897_s3] sm:$0xff]  ;;  %v258_v60 = vld [vmem:[%s897_s3 + $0x18] sm:$0xff]  ;;  %v260_v63 = vld [vmem:[%s897_s3 + $0x28] sm:$0xff] }
   0xc   :  { %558 = vmatpush1.bf16.msra.mxu0 %v557_v9  ;;  %v590_v58 = vpack.c.bf16 %v256_v57, %v255_v56  ;;  %v593_v61 = vpack.c.bf16 %v258_v60, %v257_v59  ;;  %v259_v62 = vld [vmem:[%s897_s3 + $0x20] sm:$0xff]  ;;  %v261_v2 = vld [vmem:[%s897_s3 + $0x30] sm:$0xff]  ;;  %v262_v3 = vld [vmem:[%s897_s3 + $0x38] sm:$0xff] }
   0xd   :  { %559 = vmatprep.subr.bf16.mxu0 %v644_v0  ;;  %v596_v1 = vpack.c.bf16 %v260_v63, %v259_v62  ;;  %v599_v4 = vpack.c.bf16 %v262_v3, %v261_v2  ;;  %v263_v5 = vld [vmem:[%s897_s3 + $0x40] sm:$0xff]  ;;  %v264_v6 = vld [vmem:[%s897_s3 + $0x48] sm:$0xff]  ;;  %v265_v8 = vld [vmem:[%s897_s3 + $0x50] sm:$0xff]  ;;  %v273_v63 = vsub.s32 3, %v842_v18 }
   0xe   :  { %591 = vmatpush3.bf16.msra.mxu1 %v590_v58  ;;  %v602_v7 = vpack.c.bf16 %v264_v6, %v263_v5  ;;  %v266_v9 = vld [vmem:[%s897_s3 + $0x58] sm:$0xff]  ;;  %v267_v11 = vld [vmem:[%s897_s3 + $0x60] sm:$0xff]  ;;  %v268_v12 = vld [vmem:[%s897_s3 + $0x68] sm:$0xff] }
   0xf   :  { %592 = vmatprep.subr.bf16.mxu1 %v644_v0  ;;  %v605_v10 = vpack.c.bf16 %v266_v9, %v265_v8  ;;  %v269_v14 = vld [vmem:[%s897_s3 + $0x70] sm:$0xff]  ;;  %v270_v15 = vld [vmem:[%s897_s3 + $0x78] sm:$0xff]  ;;  %v848_v20 = vld [vmem:[%s898_s5] sm:$0x1f] }
  0x10   :  { %561 = vmatpush1.bf16.msra.mxu0 %v560_v13  ;;  %v608_v13 = vpack.c.bf16 %v268_v12, %v267_v11  ;;  %v346_v50 = vld [vmem:[%s899_s4] sm:$0xff]  ;;  %v349_v56 = vld [vmem:[%s899_s4 + $0x18] sm:$0xff]  ;;  %v351_v59 = vld [vmem:[%s899_s4 + $0x28] sm:$0xff] }
  0x11   :  { %562 = vmatprep.subr.bf16.mxu0 %v644_v0  ;;  %v350_v58 = vld [vmem:[%s899_s4 + $0x20] sm:$0xff] }
  0x12   :  { %594 = vmatpush3.bf16.msra.mxu1 %v593_v61  ;;  %v620_v60 = vpack.c.bf16 %v351_v59, %v350_v58  ;;  %v353_v61 = vld [vmem:[%s899_s4 + $0x38] sm:$0xff] }
  0x13   :  { %595 = vmatprep.subr.bf16.mxu1 %v644_v0 }
  0x14   :  { %564 = vmatpush1.bf16.msra.mxu0 %v563_v16  ;;  %v611_v16 = vpack.c.bf16 %v270_v15, %v269_v14 }
  0x15   :  { %565 = vmatprep.subr.bf16.mxu0 %v644_v0 }
  0x16   :  { %597 = vmatpush3.bf16.msra.mxu1 %v596_v1  ;;  %v274_v1 = vrot.slane %v848_v20, %v273_v63 }
  0x17   :  { %598 = vmatprep.subr.bf16.mxu1 %v644_v0 }
  0x18   :  { %567 = vmatpush1.bf16.msra.mxu0 %v566_v19  ;;  %v146_v19 = vsub.s32 0, %v842_v18 }
  0x19   :  { %568 = vmatprep.subr.bf16.mxu0 %v644_v0 }
  0x1a   :  { %600 = vmatpush3.bf16.msra.mxu1 %v599_v4  ;;  %v147_v21 = vrot.slane %v848_v20, %v146_v19 }
  0x1b   :  { %601 = vmatprep.subr.bf16.mxu1 %v644_v0 }
  0x1c   :  { %570 = vmatpush1.bf16.msra.mxu0 %v569_v22 }
  0x1d   :  { %571 = vmatprep.subr.bf16.mxu0 %v644_v0 }
  0x1e   :  { %603 = vmatpush3.bf16.msra.mxu1 %v602_v7 }
  0x1f   :  { %604 = vmatprep.subr.bf16.mxu1 %v644_v0 }
  0x20   :  { %573 = vmatpush1.bf16.msra.mxu0 %v572_v25 }
  0x21   :  { %574 = vmatprep.subr.bf16.mxu0 %v644_v0 }
  0x22   :  { %606 = vmatpush3.bf16.msra.mxu1 %v605_v10 }
  0x23   :  { %607 = vmatprep.subr.bf16.mxu1 %v644_v0 }
  0x24   :  { %576 = vmatpush1.bf16.msra.mxu0 %v575_v28 }
  0x25   :  { %577 = vmatprep.subr.bf16.mxu0 %v644_v0 }
  0x26   :  { %609 = vmatpush3.bf16.msra.mxu1 %v608_v13 }
  0x27   :  { %610 = vmatprep.subr.bf16.mxu1 %v644_v0 }
  0x28   :  { %579 = vmatpush1.bf16.msra.mxu0 %v578_v31 }
  0x29   :  { %580 = vmatprep.subr.bf16.mxu0 %v644_v0 }
  0x2a   :  { %612 = vmatpush3.bf16.msra.mxu1 %v611_v16 }
  0x2b   :  { %613 = vmatprep.subr.bf16.mxu1 %v644_v0 }
  0x2c   :  { %582 = vmatpush1.bf16.msra.mxu0 %v581_v34 }
  0x2d   :  { %583 = vmatprep.subr.bf16.mxu0 %v644_v0 }
  0x2f   :  { %116 = vmatmul.mubr.f32.vlgmr.msra.gmra.mrb[0].mxu0 %v23_v35 }
  0x30   :  { %493 = vmatprep.mubr.msk.f32.mxu0 %vm646_vm1, %v647_v48  ;;  %585 = vmatpush3.bf16.msra.mxu0 %v584_v49 }
  0x31   :  { %586 = vmatprep.subr.bf16.mxu0 %v644_v0 }
  0x34   :  { %588 = vmatpush3.bf16.msra.mxu0 %v587_v51  ;;  %v347_v51 = vld [vmem:[%s899_s4 + $0x8] sm:$0xff] }
 0x102   :  { %v117_v36 = vpop.f32.mrb[0].mxu0 }
 0x103   :  { %630 = vtanh.f32 %v117_v36  ;;  %v119_v37 = vpop.f32.mrb[1].mxu0  ;;  %v451_v39 = vmul.f32 -1.442695, %v117_v36 }
 0x105   :  { %632 = vpow2.f32 %v451_v39 }
 0x10d   :  { %v631_v38 = vpop.eup %630 }
 0x10e   :  { %129 = vrot.lane.b32.xlu0 %v631_v38, %s645_s21 }
 0x10f   :  { %v633_v40 = vpop.eup %632 }
 0x110   :  { %v124_v41 = vadd.f32 1.0, %v633_v40 }
 0x112   :  { %634 = vrcp.f32 %v124_v41 }
 0x11c   :  { %v635_v42 = vpop.eup %634 }
 0x180   :  { %v130_v43 = vpop.permute.xlu0 %129 }
 0x181   :  { %v132_v44 = vmul.f32 %v635_v42, %v130_v43  ;;  %v251_v43 = vsub.s32 2, %v842_v18 }
 0x183   :  { %636 = vtanh.f32 %v132_v44  ;;  %v252_v47 = vrot.slane %v848_v20, %v251_v43 }
 0x18d   :  { %v637_v52 = vpop.eup %636 }
 0x18e   :  { %135 = vrot.lane.b32.xlu0 %v637_v52, %s648_s28 }
 0x200   :  { %v136_v53 = vpop.permute.xlu0 %135 }
 0x201   :  { %v138_v54 = vmul.f32 %v635_v42, %v136_v53  ;;  %v246_v42 = vsub.s32 1, %v842_v18  ;;  %v614_v53 = vpack.c.bf16 %v347_v51, %v346_v50 }
 0x203   :  { %149 = vrot.lane.b32.xlu1 %v138_v54, %s648_s28  ;;  %v247_v44 = vrot.slane %v848_v20, %v246_v42 }
 0x275   :  { %v150_v55 = vpop.permute.xlu1 %149 }
 0x276   :  { %494 = vmatmul.mubr.msk.f32.vlgmr.msra.gmra.mrb[2].mxu0 %vm151_vm2, %v150_v55  ;;  %v348_v55 = vld [vmem:[%s899_s4 + $0x10] sm:$0xff] }
 0x277   :  { %v617_v57 = vpack.c.bf16 %v349_v56, %v348_v55 }
 0x349   :  { %v220_v22 = vpop.f32.mrb[2].mxu0 }
 0x34a   :  { %v221_v23 = vadd.f32 %v220_v22, %v147_v21  ;;  %v495_v24 = vpop.f32.mrb[3].mxu0 }
 0x34c   :  { %v224_v25 = vrot.slane %v221_v23, 4 }
 0x34e   :  { %v225_v26 = vadd.f32 %v224_v25, %v221_v23 }
 0x350   :  { %v226_v27 = vrot.slane %v225_v26, 2 }
 0x352   :  { %v227_v28 = vadd.f32 %v226_v27, %v225_v26 }
 0x354   :  { %v228_v29 = vrot.slane %v227_v28, 1 }
 0x356   :  { %v229_v30 = vadd.f32 %v228_v29, %v227_v28 }
 0x358   :  { %v231_v31 = vmul.f32 0.125, %v229_v30 }
 0x35a   :  { %v232_v32 = vsub.f32 %v221_v23, %v231_v31 }
 0x35c   :  { %v233_v33 = vmul.f32 %v232_v32, %v232_v32 }
 0x35e   :  { %v234_v34 = vrot.slane %v233_v33, 4 }
 0x360   :  { %v235_v35 = vadd.f32 %v234_v34, %v233_v33 }
 0x362   :  { %v236_v36 = vrot.slane %v235_v35, 2 }
 0x364   :  { %v237_v37 = vadd.f32 %v236_v36, %v235_v35 }
 0x366   :  { %v238_v38 = vrot.slane %v237_v37, 1 }
 0x368   :  { %v239_v39 = vadd.f32 %v238_v38, %v237_v37 }
 0x36a   :  { %v240_v40 = vmul.f32 0.125, %v239_v39 }
 0x36c   :  { %v241_v41 = vadd.f32 1e-05, %v240_v40 }
 0x36e   :  { %638 = vrsqrt.f32 %v241_v41 }
 0x378   :  { %v639_v45 = vpop.eup %638 }
 0x379   :  { %v243_v46 = vmul.f32 %v639_v45, %v232_v32 }
 0x37b   :  { %v248_v49 = vmul.f32 %v247_v44, %v243_v46 }
 0x37d   :  { %v253_v52 = vadd.f32 %v252_v47, %v248_v49 }
 0x37f   :  { %v254_v54 = vmax.f32 %v253_v52, 0.0 }
 0x381   :  { %529 = vmatmul.mubr.f32.vlgmr.msra.gmra.mrb[0].mxu1 %v254_v54 }
 0x382   :  { %615 = vmatpush3.bf16.msra.mxu1 %v614_v53  ;;  %547 = vmatprep.mubr.msk.f32.mxu1 %vm646_vm1, %v647_v48  ;;  %v352_v48 = vld [vmem:[%s899_s4 + $0x30] sm:$0xff] }
 0x383   :  { %616 = vmatprep.subr.bf16.mxu1 %v644_v0  ;;  %v623_v62 = vpack.c.bf16 %v353_v61, %v352_v48 }
 0x386   :  { %618 = vmatpush3.bf16.msra.mxu1 %v617_v57 }
 0x387   :  { %619 = vmatprep.subr.bf16.mxu1 %v644_v0 }
 0x38a   :  { %621 = vmatpush3.bf16.msra.mxu1 %v620_v60 }
 0x38b   :  { %622 = vmatprep.subr.bf16.mxu1 %v644_v0  ;;  %v356_v0 = vsub.s32 4, %v842_v18 }
 0x38d   :  { %v357_v6 = vrot.slane %v848_v20, %v356_v0 }
 0x38e   :  { %624 = vmatpush3.bf16.msra.mxu1 %v623_v62 }
 0x454   :  { %v341_v2 = vpop.f32.mrb[0].mxu1 }
 0x455   :  { %v342_v3 = vadd.f32 %v341_v2, %v274_v1  ;;  %v530_v4 = vpop.f32.mrb[1].mxu1 }
 0x457   :  { %v345_v5 = vmax.f32 %v342_v3, 0.0 }
 0x459   :  { %548 = vmatmul.mubr.msk.f32.vlgmr.msra.gmra.mrb[2].mxu1 %vm358_vm3, %v345_v5 }
 0x52c   :  { %v428_v7 = vpop.f32.mrb[2].mxu1 }
 0x52d   :  { %v429_v8 = vadd.f32 %v428_v7, %v357_v6  ;;  %v549_v9 = vpop.f32.mrb[3].mxu1 }
 0x52f   :  { %v432_v10 = vmax.f32 %v429_v8, 0.0 }
 0x531   :  { %v434_v11 = vsel %vm433_vm4, %v432_v10, -inf }
 0x532   :  { %435 = vmax.xlane.f32.xlu1 %v434_v11 }
 0x5bf   :  { %v436_v12 = vpop.xlane.xlu1 %435 }
 0x5c0   :  { %v437_v13 = vsub.f32 %v432_v10, %v436_v12 }
 0x5c2   :  { %v438_v14 = vmul.f32 1.442695, %v437_v13 }
 0x5c4   :  { %640 = vpow2.f32 %v438_v14 }
 0x5ce   :  { %v641_v15 = vpop.eup %640 }
 0x5cf   :  { %v440_v16 = vsel %vm433_vm4, %v641_v15, 0.0 }
 0x5d0   :  { %441 = vadd.xlane.f32.xlu0 %v440_v16 }
 0x65d   :  { %v442_v17 = vpop.xlane.xlu0 %441 }
 0x65e   :  { %642 = vrcp.f32 %v442_v17 }
 0x668   :  { %v643_v18 = vpop.eup %642 }
 0x669   :  { %v444_v19 = vmul.f32 %v643_v18, %v641_v15 }
 0x66b   :  { %445 = vst.msk [vmem:[%s900_s6] sm:$0xff] %vm433_vm4, %v444_v19 }

</bundles_post_ra>
